<compile_context>
chip_gen: v7x
topology: tpu7x:2x2x1
jax: 0.10.0
libtpu: 0.0.40
codegen_flags: <defaults>
</compile_context>

<pallas_src>
import jax
import jax.numpy as jnp
from jax.experimental import pallas as pl
from jax.experimental.pallas import tpu as pltpu

# ---- problem sizes (small, consistent with the module) ---------------------
N_STEPS = 4    # number of (batch, target) steps fused into one pallas_call
B = 8          # batch per step
S = 8          # sequence length
V = 32         # vocab size (len(dataset.dict))
D = 32         # embed_dim
H = 32         # model hidden dim (== template ncol)
C = 16         # number of classes
T_CNT = 4      # template_count
NROW = 8       # template nrow
NCOL = H       # template ncol

NB = N_STEPS * B                # fused M dimension (32 rows)
OUT_W = 128                     # lane-dense packed output width
_PAD = OUT_W - (C + D + 1)      # zero padding lanes


def task_kernel(ids_ref, tgt_ref, wbig_ref, b1_ref, w2_ref, b2_ref, out_ref):
    ids = ids_ref[...]                                   # (NB, S) int32
    tgt = tgt_ref[...]                                   # (NB, 1) int32

    # ---- fused embedding gather + mean pool + first layer -------------------
    # counts[b, v] = #{s: ids[b, s] == v}  (raw integer counts, exact in bf16;
    # the 1/S mean scale is folded into wbig in the wrapper).
    vocab_iota = jax.lax.broadcasted_iota(jnp.int32, (NB, V), 1)
    counts = jnp.zeros((NB, V), jnp.float32)
    for s in range(S):                                   # static unroll: 8 VPU cmp+adds
        counts = counts + (vocab_iota == ids[:, s][:, None]).astype(jnp.float32)

    # Single MXU push: [pooled | pooled@w1] = counts @ ([emb | emb@w1] / S)
    cols = jnp.dot(counts.astype(jnp.bfloat16), wbig_ref[...],
                   preferred_element_type=jnp.float32)   # (NB, D + H) f32
    pooled = cols[:, :D]                                 # (NB, D)
    h = jnp.maximum(cols[:, D:] + b1_ref[...], 0.0)      # (NB, H), template bias in b1

    logits = jnp.dot(h.astype(jnp.bfloat16), w2_ref[...],
                     preferred_element_type=jnp.float32) + b2_ref[...]  # (NB, C)

    # ---- criterion: softmax cross-entropy (per-example NLL) ----------------
    cls_iota = jax.lax.broadcasted_iota(jnp.int32, (NB, C), 1)
    t_onehot = (cls_iota == tgt).astype(jnp.float32)               # (NB, C)
    m = jnp.max(logits, axis=-1, keepdims=True)
    lse = m + jnp.log(jnp.sum(jnp.exp(logits - m), axis=-1, keepdims=True))
    nll = lse - jnp.sum(t_onehot * logits, axis=-1, keepdims=True)  # (NB, 1)

    # ---- lane-dense packed store: [logits | pooled | nll | zeros] ----------
    out_ref[...] = jnp.concatenate(
        [logits, pooled, nll, jnp.zeros((NB, _PAD), jnp.float32)], axis=-1)


def task_forward(params, ids, targets):
    """Equivalent of Task.forward for one (model, criterion) pair, with all
    N_STEPS independent (ids, targets) batches fused into one kernel call."""
    n = ids.shape[0]
    nb = n * B
    assert nb == NB

    # Hoisted template conditioning: fold mean(template) into the layer-1 bias.
    tmpl_bias = jnp.mean(params['template'].reshape(-1, NCOL), axis=0,
                         keepdims=True)                            # (1, H)
    b1_eff = params['b1'] + tmpl_bias

    # Fused weight slab: [emb | emb @ w1] / S  -> one MXU push in the kernel.
    w_big = jnp.concatenate(
        [params['emb'], params['emb'] @ params['w1']], axis=1) * (1.0 / S)
    w_big_bf = w_big.astype(jnp.bfloat16)                          # (V, D + H)
    w2_bf = params['w2'].astype(jnp.bfloat16)                      # (H, C)

    ids2d = ids.reshape(nb, S).astype(jnp.int32)                   # (NB, S)
    tgt2d = targets.reshape(nb, 1).astype(jnp.int32)               # (NB, 1)

    packed = pl.pallas_call(
        task_kernel,
        out_shape=jax.ShapeDtypeStruct((nb, OUT_W), jnp.float32),
        grid=(1,),
        in_specs=[
            pl.BlockSpec((nb, S), lambda i: (0, 0)),        # ids (all steps fused)
            pl.BlockSpec((nb, 1), lambda i: (0, 0)),        # targets
            pl.BlockSpec((V, D + H), lambda i: (0, 0)),     # [emb | emb@w1] / S
            pl.BlockSpec((1, H), lambda i: (0, 0)),         # b1 (+ template bias)
            pl.BlockSpec((H, C), lambda i: (0, 0)),         # w2
            pl.BlockSpec((1, C), lambda i: (0, 0)),         # b2
        ],
        out_specs=pl.BlockSpec((nb, OUT_W), lambda i: (0, 0)),
    )(ids2d, tgt2d, w_big_bf, b1_eff, w2_bf, params['b2'])

    logits = packed[:, :C].reshape(n, B, C)        # (n, B, C)  -> rep
    pooled = packed[:, C:C + D].reshape(n, B, D)   # (n, B, D)  -> extra_output
    nll = packed[:, C + D].reshape(n, B)           # (n, B)
    loss = jnp.mean(nll, axis=-1)                  # per-step mean cross-entropy

    # ret_dict mirrors the PyTorch module's return structure (one entry per step)
    return {'loss': loss, 'rep': logits, 'extra_output': pooled}


def init_params(key):
    k_emb, k_tmpl, k_w1, k_w2 = jax.random.split(key, 4)
    return {
        # modules.Embedding(ntoken=V, embed_dim=D)
        'emb': jax.random.normal(k_emb, (V, D), jnp.float32) * 0.02,
        # template: FloatTensor(1, template_count, nrow, ncol), normal init
        'template': jax.random.normal(k_tmpl, (1, T_CNT, NROW, NCOL),
                                      jnp.float32) * 0.02,
        'w1': jax.random.normal(k_w1, (D, H), jnp.float32) * (1.0 / D ** 0.5),
        'b1': jnp.zeros((1, H), jnp.float32),
        'w2': jax.random.normal(k_w2, (H, C), jnp.float32) * (1.0 / H ** 0.5),
        'b2': jnp.zeros((1, C), jnp.float32),
    }


if __name__ == "__main__":
    key = jax.random.PRNGKey(0)
    k_params, k_ids, k_tgt = jax.random.split(key, 3)

    params = init_params(k_params)
    ids = jax.random.randint(k_ids, (N_STEPS, B, S), 0, V, dtype=jnp.int32)
    targets = jax.random.randint(k_tgt, (N_STEPS, B), 0, C, dtype=jnp.int32)

    out = task_forward(params, ids, targets)
    jax.block_until_ready(out)

    # TODO(synk): the original module dispatches over arbitrary ModuleDicts of
    # models/criterions (and a `writer` side-channel); only the concrete
    # classification path is kernelized.
    print("KERNEL_OK")
</pallas_src>

<mosaic_0001>
module attributes {stable_mosaic.version = 11 : i64} {
  func.func @task_kernel(%arg0: i32, %arg1: memref<32x8xi32, #tpu.memory_space<vmem>>, %arg2: memref<32x1xi32, #tpu.memory_space<vmem>>, %arg3: memref<32x64xbf16, #tpu.memory_space<vmem>>, %arg4: memref<1x32xf32, #tpu.memory_space<vmem>>, %arg5: memref<32x16xbf16, #tpu.memory_space<vmem>>, %arg6: memref<1x16xf32, #tpu.memory_space<vmem>>, %arg7: memref<32x128xf32, #tpu.memory_space<vmem>>) attributes {dimension_semantics = [#tpu.dimension_semantics<arbitrary>], iteration_bounds = array<i64: 1>, scalar_prefetch = 0 : i64, scratch_operands = 0 : i64, tpu.core_type = #tpu.core_type<tc>, window_params = [{pipeline_mode = #tpu.pipeline_mode<synchronous>, transform_indices = @transform_0, window_bounds = array<i64: 32, 8>}, {pipeline_mode = #tpu.pipeline_mode<synchronous>, transform_indices = @transform_1, window_bounds = array<i64: 32, 1>}, {pipeline_mode = #tpu.pipeline_mode<synchronous>, transform_indices = @transform_2, window_bounds = array<i64: 32, 64>}, {pipeline_mode = #tpu.pipeline_mode<synchronous>, transform_indices = @transform_3, window_bounds = array<i64: 1, 32>}, {pipeline_mode = #tpu.pipeline_mode<synchronous>, transform_indices = @transform_4, window_bounds = array<i64: 32, 16>}, {pipeline_mode = #tpu.pipeline_mode<synchronous>, transform_indices = @transform_5, window_bounds = array<i64: 1, 16>}, {pipeline_mode = #tpu.pipeline_mode<synchronous>, transform_indices = @transform_6, window_bounds = array<i64: 32, 128>}]} {
    %c0 = arith.constant 0 : index
    %c0_0 = arith.constant 0 : index
    %0 = vector.load %arg1[%c0, %c0_0] : memref<32x8xi32, #tpu.memory_space<vmem>>, vector<32x8xi32>
    %c0_1 = arith.constant 0 : index
    %c0_2 = arith.constant 0 : index
    %1 = vector.load %arg2[%c0_1, %c0_2] : memref<32x1xi32, #tpu.memory_space<vmem>>, vector<32x1xi32>
    %2 = tpu.iota {dimensions = array<i32: 1>} : vector<32x32xi32>
    %cst = arith.constant 0.000000e+00 : f32
    %3 = vector.broadcast %cst : f32 to vector<32x32xf32>
    %4 = vector.extract_strided_slice %0 {offsets = [0, 0], sizes = [32, 1], strides = [1, 1]} : vector<32x8xi32> to vector<32x1xi32>
    %5 = vector.shape_cast %4 : vector<32x1xi32> to vector<32xi32>
    %6 = vector.shape_cast %5 : vector<32xi32> to vector<32x1xi32>
    %7 = vector.broadcast %6 : vector<32x1xi32> to vector<32x32xi32>
    %8 = arith.cmpi eq, %2, %7 : vector<32x32xi32>
    %9 = arith.extui %8 : vector<32x32xi1> to vector<32x32xi32>
    %10 = arith.sitofp %9 : vector<32x32xi32> to vector<32x32xf32>
    %11 = arith.addf %3, %10 : vector<32x32xf32>
    %12 = vector.extract_strided_slice %0 {offsets = [0, 1], sizes = [32, 1], strides = [1, 1]} : vector<32x8xi32> to vector<32x1xi32>
    %13 = vector.shape_cast %12 : vector<32x1xi32> to vector<32xi32>
    %14 = vector.shape_cast %13 : vector<32xi32> to vector<32x1xi32>
    %15 = vector.broadcast %14 : vector<32x1xi32> to vector<32x32xi32>
    %16 = arith.cmpi eq, %2, %15 : vector<32x32xi32>
    %17 = arith.extui %16 : vector<32x32xi1> to vector<32x32xi32>
    %18 = arith.sitofp %17 : vector<32x32xi32> to vector<32x32xf32>
    %19 = arith.addf %11, %18 : vector<32x32xf32>
    %20 = vector.extract_strided_slice %0 {offsets = [0, 2], sizes = [32, 1], strides = [1, 1]} : vector<32x8xi32> to vector<32x1xi32>
    %21 = vector.shape_cast %20 : vector<32x1xi32> to vector<32xi32>
    %22 = vector.shape_cast %21 : vector<32xi32> to vector<32x1xi32>
    %23 = vector.broadcast %22 : vector<32x1xi32> to vector<32x32xi32>
    %24 = arith.cmpi eq, %2, %23 : vector<32x32xi32>
    %25 = arith.extui %24 : vector<32x32xi1> to vector<32x32xi32>
    %26 = arith.sitofp %25 : vector<32x32xi32> to vector<32x32xf32>
    %27 = arith.addf %19, %26 : vector<32x32xf32>
    %28 = vector.extract_strided_slice %0 {offsets = [0, 3], sizes = [32, 1], strides = [1, 1]} : vector<32x8xi32> to vector<32x1xi32>
    %29 = vector.shape_cast %28 : vector<32x1xi32> to vector<32xi32>
    %30 = vector.shape_cast %29 : vector<32xi32> to vector<32x1xi32>
    %31 = vector.broadcast %30 : vector<32x1xi32> to vector<32x32xi32>
    %32 = arith.cmpi eq, %2, %31 : vector<32x32xi32>
    %33 = arith.extui %32 : vector<32x32xi1> to vector<32x32xi32>
    %34 = arith.sitofp %33 : vector<32x32xi32> to vector<32x32xf32>
    %35 = arith.addf %27, %34 : vector<32x32xf32>
    %36 = vector.extract_strided_slice %0 {offsets = [0, 4], sizes = [32, 1], strides = [1, 1]} : vector<32x8xi32> to vector<32x1xi32>
    %37 = vector.shape_cast %36 : vector<32x1xi32> to vector<32xi32>
    %38 = vector.shape_cast %37 : vector<32xi32> to vector<32x1xi32>
    %39 = vector.broadcast %38 : vector<32x1xi32> to vector<32x32xi32>
    %40 = arith.cmpi eq, %2, %39 : vector<32x32xi32>
    %41 = arith.extui %40 : vector<32x32xi1> to vector<32x32xi32>
    %42 = arith.sitofp %41 : vector<32x32xi32> to vector<32x32xf32>
    %43 = arith.addf %35, %42 : vector<32x32xf32>
    %44 = vector.extract_strided_slice %0 {offsets = [0, 5], sizes = [32, 1], strides = [1, 1]} : vector<32x8xi32> to vector<32x1xi32>
    %45 = vector.shape_cast %44 : vector<32x1xi32> to vector<32xi32>
    %46 = vector.shape_cast %45 : vector<32xi32> to vector<32x1xi32>
    %47 = vector.broadcast %46 : vector<32x1xi32> to vector<32x32xi32>
    %48 = arith.cmpi eq, %2, %47 : vector<32x32xi32>
    %49 = arith.extui %48 : vector<32x32xi1> to vector<32x32xi32>
    %50 = arith.sitofp %49 : vector<32x32xi32> to vector<32x32xf32>
    %51 = arith.addf %43, %50 : vector<32x32xf32>
    %52 = vector.extract_strided_slice %0 {offsets = [0, 6], sizes = [32, 1], strides = [1, 1]} : vector<32x8xi32> to vector<32x1xi32>
    %53 = vector.shape_cast %52 : vector<32x1xi32> to vector<32xi32>
    %54 = vector.shape_cast %53 : vector<32xi32> to vector<32x1xi32>
    %55 = vector.broadcast %54 : vector<32x1xi32> to vector<32x32xi32>
    %56 = arith.cmpi eq, %2, %55 : vector<32x32xi32>
    %57 = arith.extui %56 : vector<32x32xi1> to vector<32x32xi32>
    %58 = arith.sitofp %57 : vector<32x32xi32> to vector<32x32xf32>
    %59 = arith.addf %51, %58 : vector<32x32xf32>
    %60 = vector.extract_strided_slice %0 {offsets = [0, 7], sizes = [32, 1], strides = [1, 1]} : vector<32x8xi32> to vector<32x1xi32>
    %61 = vector.shape_cast %60 : vector<32x1xi32> to vector<32xi32>
    %62 = vector.shape_cast %61 : vector<32xi32> to vector<32x1xi32>
    %63 = vector.broadcast %62 : vector<32x1xi32> to vector<32x32xi32>
    %64 = arith.cmpi eq, %2, %63 : vector<32x32xi32>
    %65 = arith.extui %64 : vector<32x32xi1> to vector<32x32xi32>
    %66 = arith.sitofp %65 : vector<32x32xi32> to vector<32x32xf32>
    %67 = arith.addf %59, %66 : vector<32x32xf32>
    %68 = arith.truncf %67 : vector<32x32xf32> to vector<32x32xbf16>
    %c0_3 = arith.constant 0 : index
    %c0_4 = arith.constant 0 : index
    %69 = vector.load %arg3[%c0_3, %c0_4] : memref<32x64xbf16, #tpu.memory_space<vmem>>, vector<32x64xbf16>
    %cst_5 = arith.constant dense<0.000000e+00> : vector<32x64xf32>
    %70 = tpu.matmul %68, %69, %cst_5 {dimension_numbers = #tpu.dot_dimension_numbers<[1], [0], [0], [1], [0, 0, 1, 1], [], []>} : vector<32x32xbf16>, vector<32x64xbf16>, vector<32x64xf32> -> vector<32x64xf32>
    %71 = vector.extract_strided_slice %70 {offsets = [0, 0], sizes = [32, 32], strides = [1, 1]} : vector<32x64xf32> to vector<32x32xf32>
    %72 = vector.extract_strided_slice %70 {offsets = [0, 32], sizes = [32, 32], strides = [1, 1]} : vector<32x64xf32> to vector<32x32xf32>
    %c0_6 = arith.constant 0 : index
    %c0_7 = arith.constant 0 : index
    %73 = vector.load %arg4[%c0_6, %c0_7] : memref<1x32xf32, #tpu.memory_space<vmem>>, vector<1x32xf32>
    %74 = vector.broadcast %73 : vector<1x32xf32> to vector<32x32xf32>
    %75 = arith.addf %72, %74 : vector<32x32xf32>
    %cst_8 = arith.constant 0.000000e+00 : f32
    %76 = vector.broadcast %cst_8 : f32 to vector<32x32xf32>
    %77 = arith.maximumf %75, %76 : vector<32x32xf32>
    %78 = arith.truncf %77 : vector<32x32xf32> to vector<32x32xbf16>
    %c0_9 = arith.constant 0 : index
    %c0_10 = arith.constant 0 : index
    %79 = vector.load %arg5[%c0_9, %c0_10] : memref<32x16xbf16, #tpu.memory_space<vmem>>, vector<32x16xbf16>
    %cst_11 = arith.constant dense<0.000000e+00> : vector<32x16xf32>
    %80 = tpu.matmul %78, %79, %cst_11 {dimension_numbers = #tpu.dot_dimension_numbers<[1], [0], [0], [1], [0, 0, 1, 1], [], []>} : vector<32x32xbf16>, vector<32x16xbf16>, vector<32x16xf32> -> vector<32x16xf32>
    %c0_12 = arith.constant 0 : index
    %c0_13 = arith.constant 0 : index
    %81 = vector.load %arg6[%c0_12, %c0_13] : memref<1x16xf32, #tpu.memory_space<vmem>>, vector<1x16xf32>
    %82 = vector.broadcast %81 : vector<1x16xf32> to vector<32x16xf32>
    %83 = arith.addf %80, %82 : vector<32x16xf32>
    %84 = tpu.iota {dimensions = array<i32: 1>} : vector<32x16xi32>
    %85 = vector.broadcast %1 : vector<32x1xi32> to vector<32x16xi32>
    %86 = arith.cmpi eq, %84, %85 : vector<32x16xi32>
    %87 = arith.extui %86 : vector<32x16xi1> to vector<32x16xi32>
    %88 = arith.sitofp %87 : vector<32x16xi32> to vector<32x16xf32>
    %cst_14 = arith.constant dense<0xFF800000> : vector<32xf32>
    %89 = vector.multi_reduction <maximumf>, %83, %cst_14 [1] : vector<32x16xf32> to vector<32xf32>
    %90 = vector.shape_cast %89 : vector<32xf32> to vector<32x1xf32>
    %91 = vector.broadcast %90 : vector<32x1xf32> to vector<32x16xf32>
    %92 = arith.subf %83, %91 : vector<32x16xf32>
    %93 = math.exp %92 : vector<32x16xf32>
    %cst_15 = arith.constant dense<0.000000e+00> : vector<32xf32>
    %94 = vector.multi_reduction <add>, %93, %cst_15 [1] : vector<32x16xf32> to vector<32xf32>
    %95 = vector.shape_cast %94 : vector<32xf32> to vector<32x1xf32>
    %96 = math.log %95 : vector<32x1xf32>
    %97 = arith.addf %90, %96 : vector<32x1xf32>
    %98 = arith.mulf %88, %83 : vector<32x16xf32>
    %cst_16 = arith.constant dense<0.000000e+00> : vector<32xf32>
    %99 = vector.multi_reduction <add>, %98, %cst_16 [1] : vector<32x16xf32> to vector<32xf32>
    %100 = vector.shape_cast %99 : vector<32xf32> to vector<32x1xf32>
    %101 = arith.subf %97, %100 : vector<32x1xf32>
    %cst_17 = arith.constant 0.000000e+00 : f32
    %102 = vector.broadcast %cst_17 : f32 to vector<32x79xf32>
    %103 = tpu.concatenate %83, %71, %101, %102 in 1 : vector<32x16xf32>, vector<32x32xf32>, vector<32x1xf32>, vector<32x79xf32> -> vector<32x128xf32>
    %c0_18 = arith.constant 0 : index
    %c0_19 = arith.constant 0 : index
    %104 = vector.load %arg7[%c0_18, %c0_19] : memref<32x128xf32, #tpu.memory_space<vmem>>, vector<32x128xf32>
    tpu.vector_store %arg7[%c0_18, %c0_19], %103 {strides = array<i32>} : memref<32x128xf32, #tpu.memory_space<vmem>>, vector<32x128xf32>,
    return
  }
  func.func @transform_0(%arg0: i32) -> (i32, i32) {
    %c0_i32 = arith.constant 0 : i32
    %c0_i32_0 = arith.constant 0 : i32
    %c0_i32_1 = arith.constant 0 : i32
    return %c0_i32, %c0_i32_0 : i32, i32
  }
  func.func @transform_1(%arg0: i32) -> (i32, i32) {
    %c0_i32 = arith.constant 0 : i32
    %c0_i32_0 = arith.constant 0 : i32
    %c0_i32_1 = arith.constant 0 : i32
    return %c0_i32, %c0_i32_0 : i32, i32
  }
  func.func @transform_2(%arg0: i32) -> (i32, i32) {
    %c0_i32 = arith.constant 0 : i32
    %c0_i32_0 = arith.constant 0 : i32
    %c0_i32_1 = arith.constant 0 : i32
    return %c0_i32, %c0_i32_0 : i32, i32
  }
  func.func @transform_3(%arg0: i32) -> (i32, i32) {
    %c0_i32 = arith.constant 0 : i32
    %c0_i32_0 = arith.constant 0 : i32
    %c0_i32_1 = arith.constant 0 : i32
    return %c0_i32, %c0_i32_0 : i32, i32
  }
  func.func @transform_4(%arg0: i32) -> (i32, i32) {
    %c0_i32 = arith.constant 0 : i32
    %c0_i32_0 = arith.constant 0 : i32
    %c0_i32_1 = arith.constant 0 : i32
    return %c0_i32, %c0_i32_0 : i32, i32
  }
  func.func @transform_5(%arg0: i32) -> (i32, i32) {
    %c0_i32 = arith.constant 0 : i32
    %c0_i32_0 = arith.constant 0 : i32
    %c0_i32_1 = arith.constant 0 : i32
    return %c0_i32, %c0_i32_0 : i32, i32
  }
  func.func @transform_6(%arg0: i32) -> (i32, i32) {
    %c0_i32 = arith.constant 0 : i32
    %c0_i32_0 = arith.constant 0 : i32
    %c0_i32_1 = arith.constant 0 : i32
    return %c0_i32, %c0_i32_0 : i32, i32
  }
}

</mosaic_0001>

<bundles_post_ra>
// kernel: tpu_custom_call.1
= control target key start
LH: loop header
LB: loop body
LE: loop exit
PB: predicated region body
PF: predicated region fallthrough
CT: control target
= control target key end

     0   :  { %v727_v1 = vmov 1   ;;  %v728_v2 = vmov 0   ;;  %s1004_s0 = inlined_call_operand.vmem [shape: s32[32,8], index: 0, kind: input, shape index: {}]   ;;  %s1005_s1 = inlined_call_operand.vmem [shape: s32[32,1], index: 1, kind: input, shape index: {}]   ;;  %s1006_s2 = inlined_call_operand.vmem [shape: bf16[32,64], index: 2, kind: input, shape index: {}]   ;;  %s1007_s3 = inlined_call_operand.vmem [shape: f32[1,32], index: 3, kind: input, shape index: {}]   ;;  %s1008_s4 = inlined_call_operand.vmem [shape: bf16[32,16], index: 4, kind: input, shape index: {}]   ;;  %s1009_s5 = inlined_call_operand.vmem [shape: f32[1,16], index: 5, kind: input, shape index: {}]   ;;  %s1010_s6 = inlined_call_operand.hbm [shape: f32[32,128], index: 6, kind: output, shape index: {}]  }
   0x1   :  { %v25_v0 = vld [vmem:[%s1004_s0] sm:$0xff]  ;;  %665 = vset.pattern.permute.xlu1 %v727_v1  ;;  %664 = vset.pattern.permute.xlu0 %v728_v2  ;;  %v26_v3 = vld [vmem:[%s1004_s0 + $0x8] sm:$0xff] }
   0x2   :  { %64 = vperm.xlu1 %665, %v25_v0   ;;  %36 = vperm.xlu0 %664, %v25_v0  }
   0x3   :  { %11 = vsyncpa [#allocation3], 0  ;;  %v27_v4 = vld [vmem:[%s1004_s0 + $0x10] sm:$0xff]  ;;  %v28_v5 = vld [vmem:[%s1004_s0 + $0x18] sm:$0xff]  ;;  %v729_v6 = vmov 2   ;;  %v730_v7 = vmov 3   ;;  %v33_v33 = vlaneseq }
   0x4   :  { %v731_v8 = vmov 4   ;;  %v732_v9 = vmov 5   ;;  %v733_v10 = vmov 6   ;;  %v734_v11 = vmov 7   ;;  %v683_v12 = vld [vmem:[%s1006_s2] sm:$0xff]   ;;  %v684_v13 = vld [vmem:[%s1006_s2 + $0x8] sm:$0xff]  }
   0x5   :  { %633 = vmatprep.subr.bf16.mxu0 %v683_v12  ;;  %v615_v14 = vld [vmem:[%s1007_s3] ss:$0 sm:$0xff]  ;;  %s735_s10 = smov 32   ;;  %v808_v35 = vand.u32 127, %v33_v33  ;;  %v736_v39 = vmov 0.0   ;;  %s738_s22 = smov 16  }
   0x6   :  { %67 = vperm.xlu1 %665, %v26_v3   ;;  %39 = vperm.xlu0 %664, %v26_v3  }
   0x7   :  { %634 = vmatpush3.bf16.msra.mxu0 %v683_v12 }
   0x8   :  { %635 = vmatprep.subr.bf16.mxu0 %v684_v13 }
   0xa   :  { %666 = vset.pattern.permute.xlu1 %v728_v2  ;;  %42 = vperm.xlu0 %664, %v27_v4  }
   0xb   :  { %45 = vperm.xlu1 %666, %v28_v5   ;;  %636 = vmatpush3.bf16.msra.mxu0 %v684_v13 }
   0xe   :  { %667 = vset.pattern.permute.xlu0 %v727_v1 }
   0xf   :  { %668 = vset.pattern.permute.xlu1 %v727_v1  ;;  %70 = vperm.xlu0 %667, %v27_v4  }
  0x10   :  { %73 = vperm.xlu1 %668, %v28_v5  }
  0x13   :  { %670 = vset.pattern.permute.xlu0 %v729_v6 }
  0x14   :  { %669 = vset.pattern.permute.xlu1 %v729_v6  ;;  %95 = vperm.xlu0 %670, %v26_v3  }
  0x15   :  { %92 = vperm.xlu1 %669, %v25_v0  }
  0x18   :  { %671 = vset.pattern.permute.xlu0 %v730_v7 }
  0x19   :  { %98 = vperm.xlu1 %669, %v27_v4   ;;  %120 = vperm.xlu0 %671, %v25_v0  }
  0x1d   :  { %101 = vperm.xlu1 %669, %v28_v5   ;;  %129 = vperm.xlu0 %671, %v28_v5  }
  0x21   :  { %672 = vset.pattern.permute.xlu1 %v730_v7  ;;  %674 = vset.pattern.permute.xlu0 %v731_v8 }
  0x22   :  { %123 = vperm.xlu1 %672, %v26_v3   ;;  %151 = vperm.xlu0 %674, %v26_v3  }
  0x26   :  { %126 = vperm.xlu1 %672, %v27_v4   ;;  %675 = vset.pattern.permute.xlu0 %v732_v9 }
  0x27   :  { %176 = vperm.xlu0 %675, %v25_v0  }
  0x2a   :  { %673 = vset.pattern.permute.xlu1 %v731_v8 }
  0x2b   :  { %148 = vperm.xlu1 %673, %v25_v0   ;;  %185 = vperm.xlu0 %675, %v28_v5  }
  0x2f   :  { %154 = vperm.xlu1 %673, %v27_v4   ;;  %678 = vset.pattern.permute.xlu0 %v733_v10 }
  0x30   :  { %207 = vperm.xlu0 %678, %v26_v3  }
  0x33   :  { %157 = vperm.xlu1 %673, %v28_v5  }
  0x34   :  { %679 = vset.pattern.permute.xlu0 %v734_v11 }
  0x35   :  { %232 = vperm.xlu0 %679, %v25_v0  }
  0x37   :  { %676 = vset.pattern.permute.xlu1 %v732_v9 }
  0x38   :  { %179 = vperm.xlu1 %676, %v26_v3  }
  0x39   :  { %241 = vperm.xlu0 %679, %v28_v5  }
  0x3c   :  { %182 = vperm.xlu1 %676, %v27_v4  }
  0x3d   :  { %682 = vset.pattern.permute.xlu0 %v728_v2 }
  0x40   :  { %677 = vset.pattern.permute.xlu1 %v733_v10 }
  0x41   :  { %204 = vperm.xlu1 %677, %v25_v0  }
  0x45   :  { %210 = vperm.xlu1 %677, %v27_v4  }
  0x49   :  { %213 = vperm.xlu1 %677, %v28_v5  }
  0x4d   :  { %680 = vset.pattern.permute.xlu1 %v734_v11 }
  0x4e   :  { %235 = vperm.xlu1 %680, %v26_v3  }
  0x52   :  { %238 = vperm.xlu1 %680, %v27_v4  }
  0x56   :  { %681 = vset.pattern.permute.xlu1 %v728_v2 }
  0x57   :  { %339 = vrot.lane.b32.xlu1 %v615_v14, %s735_s10 }
  0x81   :  { %v65_v15 = vpop.permute.xlu1 %64  ;;  %v37_v18 = vpop.permute.xlu0 %36 }
  0x82   :  { %vm75_vm0 = vcmp.eq.s32.totalorder %v808_v35, %v65_v15  ;;  %vm47_vm1 = vcmp.eq.s32.totalorder %v808_v35, %v37_v18 }
  0x83   :  { %v583_v40 = vsel %vm75_vm0, 1.0, %v736_v39  ;;  %v579_v41 = vsel %vm47_vm1, 1.0, %v736_v39 }
  0x84   :  { %v87_v47 = vadd.f32 %v583_v40, %v579_v41 }
  0x85   :  { %v68_v16 = vpop.permute.xlu1 %67  ;;  %v40_v21 = vpop.permute.xlu0 %39 }
  0x86   :  { %vm76_vm2 = vcmp.eq.s32.totalorder %v808_v35, %v68_v16  ;;  %vm48_vm3 = vcmp.eq.s32.totalorder %v808_v35, %v40_v21 }
  0x87   :  { %v584_v43 = vsel %vm76_vm2, 1.0, %v736_v39  ;;  %v580_v44 = vsel %vm48_vm3, 1.0, %v736_v39 }
  0x88   :  { %v88_v53 = vadd.f32 %v584_v43, %v580_v44 }
  0x89   :  { %v43_v23 = vpop.permute.xlu0 %42 }
  0x8a   :  { %v46_v17 = vpop.permute.xlu1 %45  ;;  %vm49_vm5 = vcmp.eq.s32.totalorder %v808_v35, %v43_v23 }
  0x8b   :  { %vm50_vm7 = vcmp.eq.s32.totalorder %v808_v35, %v46_v17  ;;  %v581_v48 = vsel %vm49_vm5, 1.0, %v736_v39 }
  0x8c   :  { %v582_v50 = vsel %vm50_vm7, 1.0, %v736_v39 }
  0x8e   :  { %v71_v25 = vpop.permute.xlu0 %70 }
  0x8f   :  { %v74_v19 = vpop.permute.xlu1 %73  ;;  %vm77_vm8 = vcmp.eq.s32.totalorder %v808_v35, %v71_v25 }
  0x90   :  { %vm78_vm4 = vcmp.eq.s32.totalorder %v808_v35, %v74_v19  ;;  %v585_v51 = vsel %vm77_vm8, 1.0, %v736_v39 }
  0x91   :  { %v586_v45 = vsel %vm78_vm4, 1.0, %v736_v39  ;;  %v89_v60 = vadd.f32 %v585_v51, %v581_v48  ;;  %v686_v51 = vld [vmem:[%s1008_s4 + $0x8] sm:$0xff]  }
  0x92   :  { %v90_v54 = vadd.f32 %v586_v45, %v582_v50  ;;  %v685_v50 = vld [vmem:[%s1008_s4] sm:$0xff]   ;;  %s737_s4 = smov 96  }
  0x93   :  { %v96_v27 = vpop.permute.xlu0 %95  ;;  %641 = vmatprep.subr.bf16.mxu1 %v685_v50 }
  0x94   :  { %v93_v20 = vpop.permute.xlu1 %92  ;;  %vm104_vm9 = vcmp.eq.s32.totalorder %v808_v35, %v96_v27  ;;  %642 = vmatpush3.bf16.msra.mxu1 %v685_v50 }
  0x95   :  { %vm103_vm6 = vcmp.eq.s32.totalorder %v808_v35, %v93_v20  ;;  %v588_v52 = vsel %vm104_vm9, 1.0, %v736_v39  ;;  %643 = vmatprep.subr.bf16.mxu1 %v686_v51 }
  0x96   :  { %v587_v49 = vsel %vm103_vm6, 1.0, %v736_v39  ;;  %v116_v61 = vadd.f32 %v588_v52, %v88_v53 }
  0x97   :  { %v115_v58 = vadd.f32 %v587_v49, %v87_v47 }
  0x98   :  { %v802_v22 = vpop.permute.xlu1 %98  ;;  %v121_v30 = vpop.permute.xlu0 %120  ;;  %644 = vmatpush3.bf16.msra.mxu1 %v686_v51 }
  0x99   :  { %vm131_vm10 = vcmp.eq.s32.totalorder %v808_v35, %v121_v30  ;;  %vm105_vm14 = vcmp.eq.s32.totalorder %v808_v35, %v802_v22 }
  0x9a   :  { %v591_v55 = vsel %vm131_vm10, 1.0, %v736_v39  ;;  %v589_v2 = vsel %vm105_vm14, 1.0, %v736_v39 }
  0x9b   :  { %v143_v63 = vadd.f32 %v591_v55, %v115_v58  ;;  %v117_v10 = vadd.f32 %v589_v2, %v89_v60 }
  0x9c   :  { %v102_v24 = vpop.permute.xlu1 %101  ;;  %v130_v32 = vpop.permute.xlu0 %129 }
  0x9d   :  { %vm106_vm11 = vcmp.eq.s32.totalorder %v808_v35, %v102_v24  ;;  %vm134_vm15 = vcmp.eq.s32.totalorder %v808_v35, %v130_v32 }
  0x9e   :  { %v590_v56 = vsel %vm106_vm11, 1.0, %v736_v39  ;;  %v594_v3 = vsel %vm134_vm15, 1.0, %v736_v39  ;;  %vm277_vm15 = vcmask 261120  }
  0x9f   :  { %v118_v0 = vadd.f32 %v590_v56, %v90_v54 }
  0xa1   :  { %v124_v26 = vpop.permute.xlu1 %123  ;;  %v152_v36 = vpop.permute.xlu0 %151  ;;  %v146_v11 = vadd.f32 %v594_v3, %v118_v0  ;;  %v29_v3 = vld [vmem:[%s1005_s1] sm:$0xff] }
  0xa2   :  { %vm132_vm12 = vcmp.eq.s32.totalorder %v808_v35, %v124_v26  ;;  %vm160_vm0 = vcmp.eq.s32.totalorder %v808_v35, %v152_v36 }
  0xa3   :  { %v592_v59 = vsel %vm132_vm12, 1.0, %v736_v39  ;;  %v596_v6 = vsel %vm160_vm0, 1.0, %v736_v39 }
  0xa4   :  { %v144_v4 = vadd.f32 %v592_v59, %v116_v61 }
  0xa5   :  { %v804_v28 = vpop.permute.xlu1 %126 }
  0xa6   :  { %v177_v38 = vpop.permute.xlu0 %176  ;;  %vm133_vm4 = vcmp.eq.s32.totalorder %v808_v35, %v804_v28  ;;  %v172_v14 = vadd.f32 %v596_v6, %v144_v4  ;;  %v31_v4 = vld [vmem:[%s1005_s1 + $0x10] sm:$0xff] }
  0xa7   :  { %vm187_vm1 = vcmp.eq.s32.totalorder %v808_v35, %v177_v38  ;;  %v593_v15 = vsel %vm133_vm4, 1.0, %v736_v39 }
  0xa8   :  { %v599_v8 = vsel %vm187_vm1, 1.0, %v736_v39  ;;  %v145_v22 = vadd.f32 %v593_v15, %v117_v10  ;;  %vm460_vm1 = vcmask 130048  }
  0xaa   :  { %v149_v29 = vpop.permute.xlu1 %148  ;;  %v186_v46 = vpop.permute.xlu0 %185 }
  0xab   :  { %vm159_vm13 = vcmp.eq.s32.totalorder %v808_v35, %v149_v29  ;;  %vm190_vm7 = vcmp.eq.s32.totalorder %v808_v35, %v186_v46 }
  0xac   :  { %v595_v62 = vsel %vm159_vm13, 1.0, %v736_v39  ;;  %v602_v23 = vsel %vm190_vm7, 1.0, %v736_v39  ;;  %vm554_vm7 = vcmask 400384  }
  0xad   :  { %v171_v7 = vadd.f32 %v595_v62, %v143_v63 }
  0xae   :  { %v806_v31 = vpop.permute.xlu1 %154 }
  0xaf   :  { %v208_v1 = vpop.permute.xlu0 %207  ;;  %vm161_vm5 = vcmp.eq.s32.totalorder %v808_v35, %v806_v31  ;;  %v199_v17 = vadd.f32 %v599_v8, %v171_v7  ;;  %v616_v7 = vld [vmem:[%s1009_s5] ss:$0 sm:$0xff] }
  0xb0   :  { %vm216_vm8 = vcmp.eq.s32.totalorder %v808_v35, %v208_v1  ;;  %v597_v18 = vsel %vm161_vm5, 1.0, %v736_v39 }
  0xb1   :  { %v604_v24 = vsel %vm216_vm8, 1.0, %v736_v39  ;;  %v173_v27 = vadd.f32 %v597_v18, %v145_v22 }
  0xb2   :  { %v158_v34 = vpop.permute.xlu1 %157 }
  0xb3   :  { %vm162_vm2 = vcmp.eq.s32.totalorder %v808_v35, %v158_v34 }
  0xb4   :  { %v598_v9 = vsel %vm162_vm2, 1.0, %v736_v39  ;;  %v233_v13 = vpop.permute.xlu0 %232 }
  0xb5   :  { %v174_v19 = vadd.f32 %v598_v9, %v146_v11  ;;  %vm243_vm10 = vcmp.eq.s32.totalorder %v808_v35, %v233_v13 }
  0xb6   :  { %v607_v29 = vsel %vm243_vm10, 1.0, %v736_v39 }
  0xb7   :  { %v810_v37 = vpop.permute.xlu1 %179  ;;  %v202_v32 = vadd.f32 %v602_v23, %v174_v19 }
  0xb8   :  { %vm188_vm3 = vcmp.eq.s32.totalorder %v808_v35, %v810_v37  ;;  %v242_v25 = vpop.permute.xlu0 %241 }
  0xb9   :  { %v600_v12 = vsel %vm188_vm3, 1.0, %v736_v39  ;;  %vm246_vm13 = vcmp.eq.s32.totalorder %v808_v35, %v242_v25 }
  0xba   :  { %v200_v21 = vadd.f32 %v600_v12, %v172_v14 }
  0xbb   :  { %v821_v42 = vpop.permute.xlu1 %182 }
  0xbc   :  { %vm189_vm9 = vcmp.eq.s32.totalorder %v808_v35, %v821_v42  ;;  %v228_v33 = vadd.f32 %v604_v24, %v200_v21  ;;  %v610_v42 = vsel %vm246_vm13, 1.0, %v736_v39  ;;  %v30_v21 = vld [vmem:[%s1005_s1 + $0x8] sm:$0xff] }
  0xbd   :  { %v601_v28 = vsel %vm189_vm9, 1.0, %v736_v39 }
  0xbe   :  { %v201_v37 = vadd.f32 %v601_v28, %v173_v27 }
  0xc0   :  { %v205_v57 = vpop.permute.xlu1 %204 }
  0xc1   :  { %vm215_vm6 = vcmp.eq.s32.totalorder %v808_v35, %v205_v57 }
  0xc2   :  { %v603_v20 = vsel %vm215_vm6, 1.0, %v736_v39  ;;  %vm549_vm6 = vcmask 392192  }
  0xc3   :  { %v227_v26 = vadd.f32 %v603_v20, %v199_v17  ;;  %v32_v20 = vld [vmem:[%s1005_s1 + $0x18] sm:$0xff]  ;;  %s739_s1 = smov [#allocation2]  }
  0xc4   :  { %v211_v5 = vpop.permute.xlu1 %210  ;;  %s568_s23 = sshll.u32 %s739_s1, 4  ;;  %s569_s23 = int_to_ptr.vmem [resolvable:$true] %s568_s23 }
  0xc5   :  { %vm217_vm12 = vcmp.eq.s32.totalorder %v808_v35, %v211_v5  ;;  %v255_v38 = vadd.f32 %v607_v29, %v227_v26  ;;  %s703_s24 = scalar_lea.vmem %s569_s23, 512  ;;  %p708_p1 = scmp.lt.s32.totalorder %s569_s23, %s569_s23 }
  0xc6   :  { %v605_v34 = vsel %vm217_vm12, 1.0, %v736_v39  ;;  %p704_p0 = scmp.ne.s32.totalorder %s569_s23, %s703_s24  ;;  %p709_p2 = scmp.lt.s32.totalorder %s703_s24, %s703_s24 }
  0xc7   :  { %v229_v44 = vadd.f32 %v605_v34, %v201_v37 }
  0xc8   :  { %v214_v16 = vpop.permute.xlu1 %213  ;;  %p710_p3 = por %p709_p2, %p708_p1 }
  0xc9   :  { %vm218_vm11 = vcmp.eq.s32.totalorder %v808_v35, %v214_v16 }
  0xca   :  { %v606_v30 = vsel %vm218_vm11, 1.0, %v736_v39  ;;  %p711_p4 = pnand %p710_p3, %p704_p0 }
  0xcb   :  { %v230_v40 = vadd.f32 %v606_v30, %v202_v32 }
  0xcd   :  { %v236_v31 = vpop.permute.xlu1 %235  ;;  %v258_v47 = vadd.f32 %v610_v42, %v230_v40 }
  0xce   :  { %vm244_vm14 = vcmp.eq.s32.totalorder %v808_v35, %v236_v31 }
  0xcf   :  { %v608_v36 = vsel %vm244_vm14, 1.0, %v736_v39 }
  0xd0   :  { %v256_v41 = vadd.f32 %v608_v36, %v228_v33 }
  0xd1   :  { %v239_v43 = vpop.permute.xlu1 %238 }
  0xd2   :  { %vm245_vm0 = vcmp.eq.s32.totalorder %v808_v35, %v239_v43  ;;  %v259_v45 = vpack.c.bf16 %v256_v41, %v255_v38 }
  0xd3   :  { %v609_v46 = vsel %vm245_vm0, 1.0, %v736_v39 }
  0xd4   :  { %v257_v48 = vadd.f32 %v609_v46, %v229_v44  ;;  %637 = vmatprep.mubr.msk.bf16.mxu0 %vm277_vm15, %v259_v45 }
  0xd5   :  { %v340_v52 = vpop.permute.xlu1 %339 }
  0xd6   :  { %v260_v49 = vpack.c.bf16 %v258_v47, %v257_v48 }
  0xd8   :  { %638 = vmatmul.mubr.msk.bf16.vlgmr.msra.gmra.mrb[0].mxu0 %vm277_vm15, %v260_v49 }
 0x1ab   :  { %v891_v53 = vpop.f32.mrb[0].mxu0 }
 0x1ac   :  { %v344_v54 = vadd.f32 %v891_v53, %v340_v52  ;;  %v318_v55 = vpop.f32.mrb[1].mxu0 }
 0x1ad   :  { %v342_v56 = vadd.f32 %v340_v52, %v318_v55  ;;  %v894_v57 = vpop.f32.mrb[2].mxu0 }
 0x1ae   :  { %v345_v58 = vadd.f32 %v894_v57, %v340_v52  ;;  %v897_v59 = vpop.f32.mrb[3].mxu0  ;;  %v348_v61 = vmax.f32 %v344_v54, 0.0 }
 0x1af   :  { %v343_v60 = vadd.f32 %v340_v52, %v897_v59  ;;  %v346_v63 = vmax.f32 %v342_v56, 0.0 }
 0x1b0   :  { %v349_v62 = vmax.f32 %v345_v58, 0.0 }
 0x1b1   :  { %v347_v0 = vmax.f32 %v343_v60, 0.0 }
 0x1b2   :  { %v351_v1 = vpack.c.bf16 %v349_v62, %v348_v61 }
 0x1b3   :  { %v350_v2 = vpack.c.bf16 %v347_v0, %v346_v63 }
 0x1b4   :  { %367 = vrot.lane.b32.xlu1 %v351_v1, %s737_s4 }
 0x1b5   :  { %365 = vrot.lane.b32.xlu0 %v350_v2, %s737_s4 }
 0x1b8   :  { %437 = vperm.xlu1 %681, %v29_v3  }
 0x1bc   :  { %443 = vperm.xlu1 %681, %v31_v4  }
 0x226   :  { %v368_v6 = vpop.permute.xlu1 %367 }
 0x227   :  { %v366_v5 = vpop.permute.xlu0 %365 }
 0x228   :  { %645 = vmatprep.mubr.msk.bf16.mxu1 %vm277_vm15, %v366_v5 }
 0x229   :  { %646 = vmatmul.mubr.msk.bf16.vlgmr.msra.gmra.mrb[0].mxu1 %vm277_vm15, %v368_v6 }
 0x237   :  { %v438_v22 = vpop.permute.xlu1 %437 }
 0x238   :  { %vm448_vm3 = vcmp.eq.s32.totalorder %v808_v35, %v438_v22 }
 0x239   :  { %v621_v27 = vsel %vm448_vm3, 1.0, %v736_v39 }
 0x23b   :  { %v444_v23 = vpop.permute.xlu1 %443 }
 0x23c   :  { %vm450_vm2 = vcmp.eq.s32.totalorder %v808_v35, %v444_v23 }
 0x23d   :  { %v623_v24 = vsel %vm450_vm2, 1.0, %v736_v39 }
 0x2fc   :  { %v647_v8 = vpop.f32.mrb[0].mxu1 }
 0x2fd   :  { %v911_v9 = vadd.f32 %v647_v8, %v616_v7  ;;  %v421_v10 = vpop.f32.mrb[1].mxu1 }
 0x2fe   :  { %v648_v11 = vpop.f32.mrb[2].mxu1  ;;  %v913_v12 = vadd.f32 %v616_v7, %v421_v10 }
 0x2ff   :  { %v424_v13 = vpop.f32.mrb[3].mxu1  ;;  %v467_v14 = vsel %vm460_vm1, %v911_v9, -inf  ;;  %v921_v17 = vadd.f32 %v648_v11, %v616_v7  ;;  %v511_v25 = vmul.f32 %v623_v24, %v911_v9 }
 0x300   :  { %v917_v15 = vadd.f32 %v616_v7, %v424_v13  ;;  %468 = vmax.xlane.f32.xlu0 %v467_v14  ;;  %v461_v18 = vsel %vm460_vm1, %v913_v12, -inf  ;;  %v509_v28 = vmul.f32 %v621_v27, %v913_v12 }
 0x301   :  { %v470_v19 = vsel %vm460_vm1, %v921_v17, -inf  ;;  %v519_v26 = vsel %vm460_vm1, %v511_v25, 0.0 }
 0x302   :  { %v464_v16 = vsel %vm460_vm1, %v917_v15, -inf  ;;  %v513_v29 = vsel %vm460_vm1, %v509_v28, 0.0 }
 0x303   :  { %465 = vmax.xlane.f32.xlu1 %v464_v16 }
 0x304   :  { %462 = vmax.xlane.f32.xlu0 %v461_v18 }
 0x308   :  { %471 = vmax.xlane.f32.xlu0 %v470_v19 }
 0x314   :  { %446 = vperm.xlu1 %681, %v32_v20  }
 0x31e   :  { %440 = vperm.xlu0 %682, %v30_v21  }
 0x338   :  { %520 = vadd.xlane.f32.xlu1 %v519_v26 }
 0x349   :  { %533 = vrot.lane.b32.xlu1 %v318_v55, %s738_s22 }
 0x36d   :  { %514 = vadd.xlane.f32.xlu1 %v513_v29 }
 0x38d   :  { %v942_v30 = vpop.xlane.xlu0 %468 }
 0x38e   :  { %v475_v32 = vsub.f32 %v911_v9, %v942_v30 }
 0x390   :  { %v466_v31 = vpop.xlane.xlu1 %465  ;;  %v481_v38 = vmul.f32 1.442695, %v475_v32 }
 0x391   :  { %v474_v33 = vsub.f32 %v917_v15, %v466_v31  ;;  %v947_v34 = vpop.xlane.xlu0 %462 }
 0x392   :  { %v473_v40 = vsub.f32 %v913_v12, %v947_v34 }
 0x393   :  { %v479_v36 = vmul.f32 1.442695, %v474_v33 }
 0x394   :  { %v447_v37 = vpop.permute.xlu1 %446  ;;  %v477_v44 = vmul.f32 1.442695, %v473_v40 }
 0x395   :  { %687 = vpow2.f32 %v479_v36  ;;  %vm451_vm4 = vcmp.eq.s32.totalorder %v808_v35, %v447_v37  ;;  %v953_v42 = vpop.xlane.xlu0 %471 }
 0x396   :  { %v624_v41 = vsel %vm451_vm4, 1.0, %v736_v39  ;;  %689 = vpow2.f32 %v481_v38  ;;  %v476_v45 = vsub.f32 %v921_v17, %v953_v42 }
 0x397   :  { %v512_v43 = vmul.f32 %v624_v41, %v921_v17  ;;  %691 = vpow2.f32 %v477_v44 }
 0x398   :  { %v483_v47 = vmul.f32 1.442695, %v476_v45 }
 0x399   :  { %v522_v46 = vsel %vm460_vm1, %v512_v43, 0.0 }
 0x39a   :  { %523 = vadd.xlane.f32.xlu0 %v522_v46  ;;  %693 = vpow2.f32 %v483_v47 }
 0x39d   :  { %v441_v48 = vpop.permute.xlu0 %440 }
 0x39e   :  { %vm449_vm5 = vcmp.eq.s32.totalorder %v808_v35, %v441_v48 }
 0x39f   :  { %v688_v49 = vpop.eup %687  ;;  %v622_v50 = vsel %vm449_vm5, 1.0, %v736_v39 }
 0x3a0   :  { %v488_v51 = vsel %vm460_vm1, %v688_v49, 0.0  ;;  %v510_v52 = vmul.f32 %v622_v50, %v917_v15  ;;  %v690_v55 = vpop.eup %689 }
 0x3a1   :  { %489 = vadd.xlane.f32.xlu0 %v488_v51  ;;  %v491_v56 = vsel %vm460_vm1, %v690_v55, 0.0  ;;  %v692_v58 = vpop.eup %691 }
 0x3a2   :  { %v516_v54 = vsel %vm460_vm1, %v510_v52, 0.0  ;;  %v485_v60 = vsel %vm460_vm1, %v692_v58, 0.0 }
 0x3a3   :  { %517 = vadd.xlane.f32.xlu1 %v516_v54 }
 0x3a4   :  { %v694_v35 = vpop.eup %693 }
 0x3a5   :  { %v494_v39 = vsel %vm460_vm1, %v694_v35, 0.0 }
 0x3a7   :  { %492 = vadd.xlane.f32.xlu1 %v491_v56 }
 0x3ab   :  { %486 = vadd.xlane.f32.xlu1 %v485_v60 }
 0x3af   :  { %495 = vadd.xlane.f32.xlu1 %v494_v39 }
 0x3b7   :  { %535 = vrot.lane.b32.xlu0 %v897_v59, %s738_s22 }
 0x3c0   :  { %537 = vrot.lane.b32.xlu1 %v891_v53, %s738_s22 }
 0x3c4   :  { %539 = vrot.lane.b32.xlu1 %v894_v57, %s738_s22 }
 0x3c5   :  { %v521_v61 = vpop.xlane.xlu1 %520 }
 0x3c9   :  { %v534_v62 = vpop.permute.xlu1 %533 }
 0x3ca   :  { %v545_v28 = vsel %vm460_vm1, %v913_v12, %v534_v62 }
 0x3fa   :  { %v515_v0 = vpop.xlane.xlu1 %514 }
 0x427   :  { %v524_v63 = vpop.xlane.xlu0 %523 }
 0x42e   :  { %v490_v1 = vpop.xlane.xlu0 %489 }
 0x42f   :  { %695 = vlog2.f32 %v490_v1 }
 0x430   :  { %v518_v2 = vpop.xlane.xlu1 %517 }
 0x432   :  { %v536_v7 = vpop.permute.xlu0 %535 }
 0x433   :  { %v546_v10 = vsel %vm460_vm1, %v917_v15, %v536_v7 }
 0x434   :  { %v493_v3 = vpop.xlane.xlu1 %492 }
 0x435   :  { %697 = vlog2.f32 %v493_v3 }
 0x438   :  { %v487_v4 = vpop.xlane.xlu1 %486 }
 0x439   :  { %v696_v5 = vpop.eup %695  ;;  %699 = vlog2.f32 %v487_v4 }
 0x43a   :  { %v500_v6 = vmul.f32 0.6931472, %v696_v5 }
 0x43c   :  { %v506_v59 = vadd.f32 %v500_v6, %v466_v31  ;;  %v496_v8 = vpop.xlane.xlu1 %495 }
 0x43d   :  { %701 = vlog2.f32 %v496_v8 }
 0x43e   :  { %v526_v53 = vsub.f32 %v506_v59, %v518_v2 }
 0x43f   :  { %v698_v57 = vpop.eup %697 }
 0x440   :  { %v551_v11 = vsel %vm549_vm6, %v546_v10, %v526_v53  ;;  %v502_v13 = vmul.f32 0.6931472, %v698_v57  ;;  %v538_v18 = vpop.permute.xlu1 %537 }
 0x441   :  { %v556_v14 = vsel %vm554_vm7, %v551_v11, 0.0  ;;  %v547_v22 = vsel %vm460_vm1, %v911_v9, %v538_v18 }
 0x442   :  { %560 = vst [vmem:[#allocation2 + $0x8] sm:$0xff] %v556_v14  ;;  %v507_v16 = vadd.f32 %v502_v13, %v942_v30 }
 0x443   :  { %v700_v19 = vpop.eup %699 }
 0x444   :  { %v527_v20 = vsub.f32 %v507_v16, %v521_v61  ;;  %v498_v21 = vmul.f32 0.6931472, %v700_v19  ;;  %v540_v31 = vpop.permute.xlu1 %539 }
 0x445   :  { %v548_v33 = vsel %vm460_vm1, %v921_v17, %v540_v31 }
 0x446   :  { %v505_v23 = vadd.f32 %v498_v21, %v947_v34  ;;  %v552_v24 = vsel %vm549_vm6, %v547_v22, %v527_v20 }
 0x447   :  { %v702_v15 = vpop.eup %701  ;;  %v557_v25 = vsel %vm554_vm7, %v552_v24, 0.0 }
 0x448   :  { %v525_v26 = vsub.f32 %v505_v23, %v515_v0  ;;  %v504_v27 = vmul.f32 0.6931472, %v702_v15  ;;  %561 = vst [vmem:[#allocation2 + $0x10] sm:$0xff] %v557_v25 }
 0x44a   :  { %v550_v29 = vsel %vm549_vm6, %v545_v28, %v525_v26  ;;  %v508_v30 = vadd.f32 %v504_v27, %v953_v42 }
 0x44b   :  { %v555_v9 = vsel %vm554_vm7, %v550_v29, 0.0 }
 0x44c   :  { %559 = vst [vmem:[#allocation2] sm:$0xff] %v555_v9  ;;  %v528_v32 = vsub.f32 %v508_v30, %v524_v63 }
 0x44e   :  { %v553_v34 = vsel %vm549_vm6, %v548_v33, %v528_v32 }
 0x44f   :  { %v558_v36 = vsel %vm554_vm7, %v553_v34, 0.0 }
 0x450   :  { %562 = vst [vmem:[#allocation2 + $0x18] sm:$0xff] %v558_v36 }
 0x451   :  { %714 = shalt.err (!%p711_p4)
}
 0x452   :  { %s715_s27 = scalar_lea.hbm %s1010_s6, 512 }
 0x453   :  { %p716_p5 = scmp.ne.s32.totalorder %s1010_s6, %s715_s27  ;;  %p719_p6 = scmp.lt.u32.totalorder %s715_s27, %s1010_s6 }
 0x455   :  { %p721_p7 = pnand %p719_p6, %p716_p5 }
 0x457   :  { %724 = shalt.err (!%p721_p7)
}
 0x458   :  { %s740_s7 = smov 128   ;;  %s741_s8 = smov 8  }
 0x459   :  { %574 = dma.vmem_to_hbm [thread:$0]  %s569_s23, 512, %s1010_s6, [#allocation3], %s740_s7, %s740_s7, %s741_s8  }
 0x45a   :  { %725 = dma.done.wait [#allocation3], 512  }
 0x45b   :  { %726 = vsyncadd [#allocation3], 4294966784 }
 0x45c   :  { %578 = vsyncpa [#allocation3], 1 }

</bundles_post_ra>
